<compile_context>
chip_gen: v6e
topology: v6e:2x2x1
jax: 0.10.0
libtpu: 0.0.40
codegen_flags: <defaults>
</compile_context>

<pallas_src>
import functools

import jax
import jax.numpy as jnp
from jax.experimental import pallas as pl
from jax.experimental.pallas import tpu as pltpu


def _round_up(x, m):
    return (x + m - 1) // m * m


def _cdiv(a, b):
    return (a + b - 1) // b


def _gate(d):
    """Overflow-safe sigmoid(-d) == softmax([l0, l1])[:, 0] with d = l1 - l0."""
    e = jnp.exp(-jnp.abs(d))
    return jnp.where(d >= 0.0, e, 1.0) / (1.0 + e)


def pdb_kernel(
    x_ref,
    w1_ref, b1_ref, gd1w_ref, gd1b_ref,
    w2_ref, b2_ref, gd2w_ref, gd2b_ref,
    out_ref,
    *, matmul_dtype,
):
    md = matmul_dtype
    x = x_ref[...].astype(md)                        # (TB, 784), cast in-kernel

    # ---- Block 1: Ass(784, 64); fused columns = [gate_hidden | branch1 | branch2]
    f1 = jnp.dot(x, w1_ref[...], preferred_element_type=jnp.float32) + b1_ref[...]
    h1 = jnp.maximum(f1[:, 0:64], 0.0)               # gate hidden (ReLU), f32
    o1a = f1[:, 64:128]                              # branch1
    o1b = f1[:, 128:192]                             # branch2
    # Gate: single difference column -> VPU mul + XLU reduce (no skinny matmul).
    d1 = jnp.sum(h1 * gd1w_ref[...], axis=1, keepdims=True) + gd1b_ref[...]
    g1 = _gate(d1)                                   # == softmax(logits1)[:, 0:1]
    y = jnp.maximum(g1 * o1a + (1.0 - g1) * o1b, 0.0)   # Ass out + outer F.relu

    # ---- Block 2: Ass(64, 10); fused columns = [gate_hidden | branch1 | branch2 | pad]
    f2 = jnp.dot(y.astype(md), w2_ref[...],
                 preferred_element_type=jnp.float32) + b2_ref[...]
    h2 = jnp.maximum(f2[:, 0:64], 0.0)
    o2a = f2[:, 64:74]
    o2b = f2[:, 74:84]
    d2 = jnp.sum(h2 * gd2w_ref[...], axis=1, keepdims=True) + gd2b_ref[...]
    g2 = _gate(d2)
    z = g2 * o2a + (1.0 - g2) * o2b                  # (TB, 10)

    # ---- log_softmax over the 10 classes (10-lane tail is hidden under DMA)
    m = jnp.max(z, axis=1, keepdims=True)
    s = z - m
    lse = jnp.log(jnp.sum(jnp.exp(s), axis=1, keepdims=True))
    out_ref[...] = (s - lse).astype(out_ref.dtype)


def _choose_tiling(B, tile_b_max):
    """Pick (tile_b, n_steps) with minimal batch padding and a useful step count."""
    # At least enough steps to cover B with <= tile_b_max rows each; prefer
    # >=2 (up to 8) steps when B is large so both v7x TCs are fed and the
    # pipeline has overlap, while keeping tiles >= ~1024 rows for DMA efficiency.
    n_steps = max(_cdiv(B, tile_b_max), min(8, _cdiv(B, 1024)), 1)
    tile_b = _round_up(_cdiv(B, n_steps), 8)
    n_steps = _cdiv(B, tile_b)
    return tile_b, n_steps


def pdb_forward(x_img, params, *, tile_b_max=2048, matmul_dtype=jnp.bfloat16):
    """x_img: (B, 1, 28, 28) -> (B, 10) log-probabilities.

    x is streamed into the kernel untouched (no host-side pad/cast of the K
    dim); pass bf16 activations to halve the dominant HBM read if available.
    """
    B = x_img.shape[0]
    x = jnp.reshape(x_img, (B, -1))                  # torch.flatten(x, 1); (B, 784)
    K = x.shape[1]                                   # 784 (full last dim in BlockSpec)

    tile_b, n_steps = _choose_tiling(B, tile_b_max)
    B_pad = tile_b * n_steps
    if B_pad != B:                                   # minimal row pad only when needed
        x = jnp.pad(x, ((0, B_pad - B), (0, 0)))

    p = params
    # Block-1 fused weight: [g1w1 | w1a | w1b] -> (784, 192).  No K padding.
    w1 = jnp.concatenate([p["g1w1"], p["w1a"], p["w1b"]], axis=1).astype(matmul_dtype)
    b1 = jnp.concatenate([p["g1b1"], p["b1a"], p["b1b"]], axis=1).astype(jnp.float32)
    # Gate head reduced to a single difference column (row-vector form, f32).
    gd1w = (p["g1w2"][:, 1:2] - p["g1w2"][:, 0:1]).T.astype(jnp.float32)     # (1, 64)
    gd1b = (p["g1b2"][:, 1:2] - p["g1b2"][:, 0:1]).astype(jnp.float32)       # (1, 1)

    # Block-2 fused weight: [g2w1 | w2a | w2b] -> (64, 84) -> pad N to 128 (tiny, resident).
    w2 = jnp.concatenate([p["g2w1"], p["w2a"], p["w2b"]], axis=1)
    n2 = w2.shape[1]
    n2_pad = _round_up(n2, 128)
    w2 = jnp.pad(w2, ((0, 0), (0, n2_pad - n2))).astype(matmul_dtype)
    b2 = jnp.concatenate([p["g2b1"], p["b2a"], p["b2b"]], axis=1)
    b2 = jnp.pad(b2, ((0, 0), (0, n2_pad - n2))).astype(jnp.float32)
    gd2w = (p["g2w2"][:, 1:2] - p["g2w2"][:, 0:1]).T.astype(jnp.float32)     # (1, 64)
    gd2b = (p["g2b2"][:, 1:2] - p["g2b2"][:, 0:1]).astype(jnp.float32)       # (1, 1)

    weight_args = [w1, b1, gd1w, gd1b, w2, b2, gd2w, gd2b]

    def _const_spec(shape):
        # Whole-array block, constant index_map: Pallas keeps it VMEM-resident
        # across grid steps (no per-step re-DMA).
        return pl.BlockSpec(shape, lambda i: (0, 0))

    weight_specs = [_const_spec(a.shape) for a in weight_args]

    weight_bytes = sum(int(a.size) * a.dtype.itemsize for a in weight_args)
    cost = pl.CostEstimate(
        flops=2 * B_pad * (K * 192 + 64 + 64 * n2_pad + 64),
        transcendentals=B_pad * 13,                  # 2 gate exps + 10 exps + 1 log
        bytes_accessed=int(x.size) * x.dtype.itemsize + B_pad * 10 * 4 + weight_bytes,
    )

    kernel = functools.partial(pdb_kernel, matmul_dtype=matmul_dtype)
    out = pl.pallas_call(
        kernel,
        out_shape=jax.ShapeDtypeStruct((B_pad, 10), jnp.float32),
        grid=(n_steps,),
        in_specs=[pl.BlockSpec((tile_b, K), lambda i: (i, 0))] + weight_specs,
        out_specs=pl.BlockSpec((tile_b, 10), lambda i: (i, 0)),
        compiler_params=pltpu.CompilerParams(
            dimension_semantics=("parallel",),       # shard batch across TCs (v7x)
            vmem_limit_bytes=48 * 1024 * 1024),      # safe on v5e/v6e/v7x
        cost_estimate=cost,
    )(x, *weight_args)
    return out[:B]


def init_params(key):
    """Deterministic synthetic parameters (shapes from the module __init__)."""
    def linear(key, cin, cout, scale=0.05):
        kw, kb = jax.random.split(key)
        w = scale * jax.random.normal(kw, (cin, cout), jnp.float32)
        b = scale * jax.random.normal(kb, (1, cout), jnp.float32)
        return w, b

    keys = jax.random.split(key, 8)
    p = {}
    # fc1 = Ass(784, 64)
    p["w1a"], p["b1a"] = linear(keys[0], 784, 64)
    p["w1b"], p["b1b"] = linear(keys[1], 784, 64)
    p["g1w1"], p["g1b1"] = linear(keys[2], 784, 64)
    p["g1w2"], p["g1b2"] = linear(keys[3], 64, 2)
    # fc2 = Ass(64, 10)
    p["w2a"], p["b2a"] = linear(keys[4], 64, 10)
    p["w2b"], p["b2b"] = linear(keys[5], 64, 10)
    p["g2w1"], p["g2b1"] = linear(keys[6], 64, 64)
    p["g2w2"], p["g2b2"] = linear(keys[7], 64, 2)
    return p


def pdb_reference(x_img, params):
    """Pure-JAX reference for correctness checking (mirrors the torch module)."""
    B = x_img.shape[0]
    x = jnp.reshape(x_img, (B, -1))

    def ass(x, wa, ba, wb, bb, gw1, gb1, gw2, gb2):
        o1 = x @ wa + ba
        o2 = x @ wb + bb
        h = jax.nn.relu(x @ gw1 + gb1)
        g = jax.nn.softmax(h @ gw2 + gb2, axis=1)
        return g[:, 0:1] * o1 + g[:, 1:2] * o2

    p = params
    y = ass(x, p["w1a"], p["b1a"], p["w1b"], p["b1b"],
            p["g1w1"], p["g1b1"], p["g1w2"], p["g1b2"])
    y = jax.nn.relu(y)
    z = ass(y, p["w2a"], p["b2a"], p["w2b"], p["b2b"],
            p["g2w1"], p["g2b1"], p["g2w2"], p["g2b2"])
    return jax.nn.log_softmax(z, axis=1)


if __name__ == "__main__":
    key = jax.random.PRNGKey(0)
    k_params, k_x = jax.random.split(key)

    params = init_params(k_params)
    x_img = jax.random.normal(k_x, (8, 1, 28, 28), jnp.float32)  # MNIST-like input

    ref = pdb_reference(x_img, params)

    # Exact-parity path (f32 MXU operands).
    out_f32 = jax.block_until_ready(
        pdb_forward(x_img, params, matmul_dtype=jnp.float32))
    assert out_f32.shape == (8, 10)
    assert jnp.allclose(out_f32, ref, atol=1e-4, rtol=1e-4), "f32 mismatch vs reference"

    # Default fast path (bf16 MXU operands, f32 accumulation) — looser tolerance.
    out_bf16 = jax.block_until_ready(pdb_forward(x_img, params))
    assert out_bf16.shape == (8, 10)
    assert jnp.allclose(out_bf16, ref, atol=5e-2, rtol=5e-2), "bf16 mismatch vs reference"

    print("KERNEL_OK")
</pallas_src>

<mosaic_0001>
module attributes {stable_mosaic.version = 11 : i64} {
  func.func @pdb_kernel(%arg0: i32, %arg1: memref<8x784xf32, #tpu.memory_space<vmem>>, %arg2: memref<784x192xf32, #tpu.memory_space<vmem>>, %arg3: memref<1x192xf32, #tpu.memory_space<vmem>>, %arg4: memref<1x64xf32, #tpu.memory_space<vmem>>, %arg5: memref<1x1xf32, #tpu.memory_space<vmem>>, %arg6: memref<64x128xf32, #tpu.memory_space<vmem>>, %arg7: memref<1x128xf32, #tpu.memory_space<vmem>>, %arg8: memref<1x64xf32, #tpu.memory_space<vmem>>, %arg9: memref<1x1xf32, #tpu.memory_space<vmem>>, %arg10: memref<8x10xf32, #tpu.memory_space<vmem>>) attributes {dimension_semantics = [#tpu.dimension_semantics<parallel>], iteration_bounds = array<i64: 1>, scalar_prefetch = 0 : i64, scratch_operands = 0 : i64, tpu.core_type = #tpu.core_type<tc>, window_params = [{transform_indices = @transform_0, window_bounds = array<i64: 8, 784>}, {pipeline_mode = #tpu.pipeline_mode<synchronous>, transform_indices = @transform_1, window_bounds = array<i64: 784, 192>}, {pipeline_mode = #tpu.pipeline_mode<synchronous>, transform_indices = @transform_2, window_bounds = array<i64: 1, 192>}, {pipeline_mode = #tpu.pipeline_mode<synchronous>, transform_indices = @transform_3, window_bounds = array<i64: 1, 64>}, {pipeline_mode = #tpu.pipeline_mode<synchronous>, transform_indices = @transform_4, window_bounds = array<i64: 1, 1>}, {pipeline_mode = #tpu.pipeline_mode<synchronous>, transform_indices = @transform_5, window_bounds = array<i64: 64, 128>}, {pipeline_mode = #tpu.pipeline_mode<synchronous>, transform_indices = @transform_6, window_bounds = array<i64: 1, 128>}, {pipeline_mode = #tpu.pipeline_mode<synchronous>, transform_indices = @transform_7, window_bounds = array<i64: 1, 64>}, {pipeline_mode = #tpu.pipeline_mode<synchronous>, transform_indices = @transform_8, window_bounds = array<i64: 1, 1>}, {transform_indices = @transform_9, window_bounds = array<i64: 8, 10>}]} {
    %c0 = arith.constant 0 : index
    %c0_0 = arith.constant 0 : index
    %0 = vector.load %arg1[%c0, %c0_0] : memref<8x784xf32, #tpu.memory_space<vmem>>, vector<8x784xf32>
    %c0_1 = arith.constant 0 : index
    %c0_2 = arith.constant 0 : index
    %1 = vector.load %arg2[%c0_1, %c0_2] : memref<784x192xf32, #tpu.memory_space<vmem>>, vector<784x192xf32>
    %cst = arith.constant dense<0.000000e+00> : vector<8x192xf32>
    %2 = tpu.matmul %0, %1, %cst {dimension_numbers = #tpu.dot_dimension_numbers<[1], [0], [0], [1], [0, 0, 1, 1], [], []>} : vector<8x784xf32>, vector<784x192xf32>, vector<8x192xf32> -> vector<8x192xf32>
    %c0_3 = arith.constant 0 : index
    %c0_4 = arith.constant 0 : index
    %3 = vector.load %arg3[%c0_3, %c0_4] : memref<1x192xf32, #tpu.memory_space<vmem>>, vector<1x192xf32>
    %4 = vector.broadcast %3 : vector<1x192xf32> to vector<8x192xf32>
    %5 = arith.addf %2, %4 : vector<8x192xf32>
    %6 = vector.extract_strided_slice %5 {offsets = [0, 0], sizes = [8, 64], strides = [1, 1]} : vector<8x192xf32> to vector<8x64xf32>
    %cst_5 = arith.constant 0.000000e+00 : f32
    %7 = vector.broadcast %cst_5 : f32 to vector<8x64xf32>
    %8 = arith.maximumf %6, %7 : vector<8x64xf32>
    %9 = vector.extract_strided_slice %5 {offsets = [0, 64], sizes = [8, 64], strides = [1, 1]} : vector<8x192xf32> to vector<8x64xf32>
    %10 = vector.extract_strided_slice %5 {offsets = [0, 128], sizes = [8, 64], strides = [1, 1]} : vector<8x192xf32> to vector<8x64xf32>
    %c0_6 = arith.constant 0 : index
    %c0_7 = arith.constant 0 : index
    %11 = vector.load %arg4[%c0_6, %c0_7] : memref<1x64xf32, #tpu.memory_space<vmem>>, vector<1x64xf32>
    %12 = vector.broadcast %11 : vector<1x64xf32> to vector<8x64xf32>
    %13 = arith.mulf %8, %12 : vector<8x64xf32>
    %cst_8 = arith.constant dense<0.000000e+00> : vector<8xf32>
    %14 = vector.multi_reduction <add>, %13, %cst_8 [1] : vector<8x64xf32> to vector<8xf32>
    %15 = vector.shape_cast %14 : vector<8xf32> to vector<8x1xf32>
    %c0_9 = arith.constant 0 : index
    %c0_10 = arith.constant 0 : index
    %16 = vector.load %arg5[%c0_9, %c0_10] : memref<1x1xf32, #tpu.memory_space<vmem>>, vector<1x1xf32>
    %17 = vector.broadcast %16 : vector<1x1xf32> to vector<8x1xf32>
    %18 = arith.addf %15, %17 : vector<8x1xf32>
    %19 = math.absf %18 : vector<8x1xf32>
    %cst_11 = arith.constant 0.000000e+00 : f32
    %20 = vector.broadcast %cst_11 : f32 to vector<8x1xf32>
    %21 = arith.subf %20, %19 : vector<8x1xf32>
    %22 = math.exp %21 : vector<8x1xf32>
    %cst_12 = arith.constant 0.000000e+00 : f32
    %23 = vector.broadcast %cst_12 : f32 to vector<8x1xf32>
    %24 = arith.cmpf oge, %18, %23 : vector<8x1xf32>
    %cst_13 = arith.constant 1.000000e+00 : f32
    %25 = vector.broadcast %cst_13 : f32 to vector<8x1xf32>
    %26 = arith.select %24, %22, %25 : vector<8x1xi1>, vector<8x1xf32>
    %cst_14 = arith.constant 1.000000e+00 : f32
    %27 = vector.broadcast %cst_14 : f32 to vector<8x1xf32>
    %28 = arith.addf %27, %22 : vector<8x1xf32>
    %29 = arith.divf %26, %28 : vector<8x1xf32>
    %30 = vector.broadcast %29 : vector<8x1xf32> to vector<8x64xf32>
    %31 = arith.mulf %30, %9 : vector<8x64xf32>
    %cst_15 = arith.constant 1.000000e+00 : f32
    %32 = vector.broadcast %cst_15 : f32 to vector<8x1xf32>
    %33 = arith.subf %32, %29 : vector<8x1xf32>
    %34 = vector.broadcast %33 : vector<8x1xf32> to vector<8x64xf32>
    %35 = arith.mulf %34, %10 : vector<8x64xf32>
    %36 = arith.addf %31, %35 : vector<8x64xf32>
    %cst_16 = arith.constant 0.000000e+00 : f32
    %37 = vector.broadcast %cst_16 : f32 to vector<8x64xf32>
    %38 = arith.maximumf %36, %37 : vector<8x64xf32>
    %c0_17 = arith.constant 0 : index
    %c0_18 = arith.constant 0 : index
    %39 = vector.load %arg6[%c0_17, %c0_18] : memref<64x128xf32, #tpu.memory_space<vmem>>, vector<64x128xf32>
    %cst_19 = arith.constant dense<0.000000e+00> : vector<8x128xf32>
    %40 = tpu.matmul %38, %39, %cst_19 {dimension_numbers = #tpu.dot_dimension_numbers<[1], [0], [0], [1], [0, 0, 1, 1], [], []>} : vector<8x64xf32>, vector<64x128xf32>, vector<8x128xf32> -> vector<8x128xf32>
    %c0_20 = arith.constant 0 : index
    %c0_21 = arith.constant 0 : index
    %41 = vector.load %arg7[%c0_20, %c0_21] : memref<1x128xf32, #tpu.memory_space<vmem>>, vector<1x128xf32>
    %42 = vector.broadcast %41 : vector<1x128xf32> to vector<8x128xf32>
    %43 = arith.addf %40, %42 : vector<8x128xf32>
    %44 = vector.extract_strided_slice %43 {offsets = [0, 0], sizes = [8, 64], strides = [1, 1]} : vector<8x128xf32> to vector<8x64xf32>
    %cst_22 = arith.constant 0.000000e+00 : f32
    %45 = vector.broadcast %cst_22 : f32 to vector<8x64xf32>
    %46 = arith.maximumf %44, %45 : vector<8x64xf32>
    %47 = vector.extract_strided_slice %43 {offsets = [0, 64], sizes = [8, 10], strides = [1, 1]} : vector<8x128xf32> to vector<8x10xf32>
    %48 = vector.extract_strided_slice %43 {offsets = [0, 74], sizes = [8, 10], strides = [1, 1]} : vector<8x128xf32> to vector<8x10xf32>
    %c0_23 = arith.constant 0 : index
    %c0_24 = arith.constant 0 : index
    %49 = vector.load %arg8[%c0_23, %c0_24] : memref<1x64xf32, #tpu.memory_space<vmem>>, vector<1x64xf32>
    %50 = vector.broadcast %49 : vector<1x64xf32> to vector<8x64xf32>
    %51 = arith.mulf %46, %50 : vector<8x64xf32>
    %cst_25 = arith.constant dense<0.000000e+00> : vector<8xf32>
    %52 = vector.multi_reduction <add>, %51, %cst_25 [1] : vector<8x64xf32> to vector<8xf32>
    %53 = vector.shape_cast %52 : vector<8xf32> to vector<8x1xf32>
    %c0_26 = arith.constant 0 : index
    %c0_27 = arith.constant 0 : index
    %54 = vector.load %arg9[%c0_26, %c0_27] : memref<1x1xf32, #tpu.memory_space<vmem>>, vector<1x1xf32>
    %55 = vector.broadcast %54 : vector<1x1xf32> to vector<8x1xf32>
    %56 = arith.addf %53, %55 : vector<8x1xf32>
    %57 = math.absf %56 : vector<8x1xf32>
    %cst_28 = arith.constant 0.000000e+00 : f32
    %58 = vector.broadcast %cst_28 : f32 to vector<8x1xf32>
    %59 = arith.subf %58, %57 : vector<8x1xf32>
    %60 = math.exp %59 : vector<8x1xf32>
    %cst_29 = arith.constant 0.000000e+00 : f32
    %61 = vector.broadcast %cst_29 : f32 to vector<8x1xf32>
    %62 = arith.cmpf oge, %56, %61 : vector<8x1xf32>
    %cst_30 = arith.constant 1.000000e+00 : f32
    %63 = vector.broadcast %cst_30 : f32 to vector<8x1xf32>
    %64 = arith.select %62, %60, %63 : vector<8x1xi1>, vector<8x1xf32>
    %cst_31 = arith.constant 1.000000e+00 : f32
    %65 = vector.broadcast %cst_31 : f32 to vector<8x1xf32>
    %66 = arith.addf %65, %60 : vector<8x1xf32>
    %67 = arith.divf %64, %66 : vector<8x1xf32>
    %68 = vector.broadcast %67 : vector<8x1xf32> to vector<8x10xf32>
    %69 = arith.mulf %68, %47 : vector<8x10xf32>
    %cst_32 = arith.constant 1.000000e+00 : f32
    %70 = vector.broadcast %cst_32 : f32 to vector<8x1xf32>
    %71 = arith.subf %70, %67 : vector<8x1xf32>
    %72 = vector.broadcast %71 : vector<8x1xf32> to vector<8x10xf32>
    %73 = arith.mulf %72, %48 : vector<8x10xf32>
    %74 = arith.addf %69, %73 : vector<8x10xf32>
    %cst_33 = arith.constant dense<0xFF800000> : vector<8xf32>
    %75 = vector.multi_reduction <maximumf>, %74, %cst_33 [1] : vector<8x10xf32> to vector<8xf32>
    %76 = vector.shape_cast %75 : vector<8xf32> to vector<8x1xf32>
    %77 = vector.broadcast %76 : vector<8x1xf32> to vector<8x10xf32>
    %78 = arith.subf %74, %77 : vector<8x10xf32>
    %79 = math.exp %78 : vector<8x10xf32>
    %cst_34 = arith.constant dense<0.000000e+00> : vector<8xf32>
    %80 = vector.multi_reduction <add>, %79, %cst_34 [1] : vector<8x10xf32> to vector<8xf32>
    %81 = vector.shape_cast %80 : vector<8xf32> to vector<8x1xf32>
    %82 = math.log %81 : vector<8x1xf32>
    %83 = vector.broadcast %82 : vector<8x1xf32> to vector<8x10xf32>
    %84 = arith.subf %78, %83 : vector<8x10xf32>
    %c0_35 = arith.constant 0 : index
    %c0_36 = arith.constant 0 : index
    %85 = vector.load %arg10[%c0_35, %c0_36] : memref<8x10xf32, #tpu.memory_space<vmem>>, vector<8x10xf32>
    tpu.vector_store %arg10[%c0_35, %c0_36], %84 {strides = array<i32>} : memref<8x10xf32, #tpu.memory_space<vmem>>, vector<8x10xf32>,
    return
  }
  func.func @transform_0(%arg0: i32) -> (i32, i32) {
    %c0_i32 = arith.constant 0 : i32
    %c0_i32_0 = arith.constant 0 : i32
    return %arg0, %c0_i32 : i32, i32
  }
  func.func @transform_1(%arg0: i32) -> (i32, i32) {
    %c0_i32 = arith.constant 0 : i32
    %c0_i32_0 = arith.constant 0 : i32
    %c0_i32_1 = arith.constant 0 : i32
    return %c0_i32, %c0_i32_0 : i32, i32
  }
  func.func @transform_2(%arg0: i32) -> (i32, i32) {
    %c0_i32 = arith.constant 0 : i32
    %c0_i32_0 = arith.constant 0 : i32
    %c0_i32_1 = arith.constant 0 : i32
    return %c0_i32, %c0_i32_0 : i32, i32
  }
  func.func @transform_3(%arg0: i32) -> (i32, i32) {
    %c0_i32 = arith.constant 0 : i32
    %c0_i32_0 = arith.constant 0 : i32
    %c0_i32_1 = arith.constant 0 : i32
    return %c0_i32, %c0_i32_0 : i32, i32
  }
  func.func @transform_4(%arg0: i32) -> (i32, i32) {
    %c0_i32 = arith.constant 0 : i32
    %c0_i32_0 = arith.constant 0 : i32
    %c0_i32_1 = arith.constant 0 : i32
    return %c0_i32, %c0_i32_0 : i32, i32
  }
  func.func @transform_5(%arg0: i32) -> (i32, i32) {
    %c0_i32 = arith.constant 0 : i32
    %c0_i32_0 = arith.constant 0 : i32
    %c0_i32_1 = arith.constant 0 : i32
    return %c0_i32, %c0_i32_0 : i32, i32
  }
  func.func @transform_6(%arg0: i32) -> (i32, i32) {
    %c0_i32 = arith.constant 0 : i32
    %c0_i32_0 = arith.constant 0 : i32
    %c0_i32_1 = arith.constant 0 : i32
    return %c0_i32, %c0_i32_0 : i32, i32
  }
  func.func @transform_7(%arg0: i32) -> (i32, i32) {
    %c0_i32 = arith.constant 0 : i32
    %c0_i32_0 = arith.constant 0 : i32
    %c0_i32_1 = arith.constant 0 : i32
    return %c0_i32, %c0_i32_0 : i32, i32
  }
  func.func @transform_8(%arg0: i32) -> (i32, i32) {
    %c0_i32 = arith.constant 0 : i32
    %c0_i32_0 = arith.constant 0 : i32
    %c0_i32_1 = arith.constant 0 : i32
    return %c0_i32, %c0_i32_0 : i32, i32
  }
  func.func @transform_9(%arg0: i32) -> (i32, i32) {
    %c0_i32 = arith.constant 0 : i32
    %c0_i32_0 = arith.constant 0 : i32
    return %arg0, %c0_i32 : i32, i32
  }
}

</mosaic_0001>

<bundles_post_ra>
// kernel: tpu_custom_call.1
= control target key start
LH: loop header
LB: loop body
LE: loop exit
PB: predicated region body
PF: predicated region fallthrough
CT: control target
= control target key end

     0   :  { %s1567_s0 = inlined_call_operand.vmem [shape: f32[8,784], index: 0, kind: input, shape index: {}]   ;;  %s1568_s1 = inlined_call_operand.vmem [shape: f32[784,192], index: 1, kind: input, shape index: {}]   ;;  %s1569_s2 = inlined_call_operand.vmem [shape: f32[1,192], index: 2, kind: input, shape index: {}]   ;;  %s1570_s3 = inlined_call_operand.vmem [shape: f32[1,64], index: 3, kind: input, shape index: {}]   ;;  %s1571_s4 = inlined_call_operand.<no memory space> [shape: f32[1,1], index: 4, kind: input, shape index: {}]   ;;  %s1572_s5 = inlined_call_operand.vmem [shape: f32[64,128], index: 5, kind: input, shape index: {}]   ;;  %s1573_s6 = inlined_call_operand.vmem [shape: f32[1,128], index: 6, kind: input, shape index: {}]   ;;  %s1574_s7 = inlined_call_operand.vmem [shape: f32[1,64], index: 7, kind: input, shape index: {}]   ;;  %s1575_s9 = inlined_call_operand.hbm [shape: f32[8,10], index: 9, kind: output, shape index: {}]   ;;  %s1576_s8 = inlined_call_operand.<no memory space> [shape: f32[1,1], index: 8, kind: input, shape index: {}]  }
   0x1   :  { %v14_v0 = vstv %s1571_s4  ;;  %v16_v1 = vstv %s1576_s8 }
   0x2   :  { %15 = vst [vmem:[#allocation2] sm:$0x1] %v14_v0  ;;  %17 = vst [vmem:[#allocation3] sm:$0x1] %v16_v1 }
   0x3   :  { %v75_v2 = vld [vmem:[%s1568_s1 + $0xf8] sm:$0xff]  ;;  %v74_v3 = vld [vmem:[%s1568_s1 + $0xf0] sm:$0xff]  ;;  %v73_v4 = vld [vmem:[%s1568_s1 + $0xe8] sm:$0xff] }
   0x4   :  { %256 = vmatprep.subr.mxu0 %v75_v2  ;;  %v139_v5 = vld [vmem:[%s1568_s1 + $0x2f8] sm:$0xff]  ;;  %v72_v6 = vld [vmem:[%s1568_s1 + $0xe0] sm:$0xff]  ;;  %v138_v7 = vld [vmem:[%s1568_s1 + $0x2f0] sm:$0xff] }
   0x5   :  { %257 = vmatpush1.msra.mxu0 %v74_v3  ;;  %327 = vmatprep.subr.mxu1 %v139_v5  ;;  %v71_v8 = vld [vmem:[%s1568_s1 + $0xd8] sm:$0xff]  ;;  %v137_v9 = vld [vmem:[%s1568_s1 + $0x2e8] sm:$0xff]  ;;  %v70_v10 = vld [vmem:[%s1568_s1 + $0xd0] sm:$0xff] }
   0x6   :  { %258 = vmatprep.subr.mxu0 %v73_v4  ;;  %328 = vmatpush1.msra.mxu1 %v138_v7  ;;  %v136_v11 = vld [vmem:[%s1568_s1 + $0x2e0] sm:$0xff]  ;;  %v135_v12 = vld [vmem:[%s1568_s1 + $0x2d8] sm:$0xff]  ;;  %v69_v13 = vld [vmem:[%s1568_s1 + $0xc8] sm:$0xff] }
   0x7   :  { %259 = vmatpush1.msra.mxu0 %v72_v6  ;;  %329 = vmatprep.subr.mxu1 %v137_v9  ;;  %v134_v14 = vld [vmem:[%s1568_s1 + $0x2d0] sm:$0xff]  ;;  %v68_v15 = vld [vmem:[%s1568_s1 + $0xc0] sm:$0xff]  ;;  %v133_v16 = vld [vmem:[%s1568_s1 + $0x2c8] sm:$0xff] }
   0x8   :  { %260 = vmatprep.subr.mxu0 %v71_v8  ;;  %330 = vmatpush1.msra.mxu1 %v136_v11  ;;  %v67_v17 = vld [vmem:[%s1568_s1 + $0xb8] sm:$0xff]  ;;  %v132_v18 = vld [vmem:[%s1568_s1 + $0x2c0] sm:$0xff]  ;;  %v66_v19 = vld [vmem:[%s1568_s1 + $0xb0] sm:$0xff] }
   0x9   :  { %261 = vmatpush1.msra.mxu0 %v70_v10  ;;  %331 = vmatprep.subr.mxu1 %v135_v12  ;;  %v131_v20 = vld [vmem:[%s1568_s1 + $0x2b8] sm:$0xff]  ;;  %v65_v21 = vld [vmem:[%s1568_s1 + $0xa8] sm:$0xff]  ;;  %v130_v22 = vld [vmem:[%s1568_s1 + $0x2b0] sm:$0xff] }
   0xa   :  { %262 = vmatprep.subr.mxu0 %v69_v13  ;;  %332 = vmatpush1.msra.mxu1 %v134_v14  ;;  %v64_v23 = vld [vmem:[%s1568_s1 + $0xa0] sm:$0xff]  ;;  %v129_v24 = vld [vmem:[%s1568_s1 + $0x2a8] sm:$0xff]  ;;  %v63_v25 = vld [vmem:[%s1568_s1 + $0x98] sm:$0xff] }
   0xb   :  { %263 = vmatpush1.msra.mxu0 %v68_v15  ;;  %333 = vmatprep.subr.mxu1 %v133_v16  ;;  %v128_v26 = vld [vmem:[%s1568_s1 + $0x2a0] sm:$0xff]  ;;  %v62_v27 = vld [vmem:[%s1568_s1 + $0x90] sm:$0xff]  ;;  %v127_v28 = vld [vmem:[%s1568_s1 + $0x298] sm:$0xff] }
   0xc   :  { %264 = vmatprep.subr.mxu0 %v67_v17  ;;  %334 = vmatpush1.msra.mxu1 %v132_v18  ;;  %v61_v29 = vld [vmem:[%s1568_s1 + $0x88] sm:$0xff]  ;;  %v126_v30 = vld [vmem:[%s1568_s1 + $0x290] sm:$0xff]  ;;  %v60_v31 = vld [vmem:[%s1568_s1 + $0x80] sm:$0xff] }
   0xd   :  { %265 = vmatpush1.msra.mxu0 %v66_v19  ;;  %335 = vmatprep.subr.mxu1 %v131_v20  ;;  %v125_v32 = vld [vmem:[%s1568_s1 + $0x288] sm:$0xff]  ;;  %v59_v33 = vld [vmem:[%s1568_s1 + $0x78] sm:$0xff]  ;;  %v124_v34 = vld [vmem:[%s1568_s1 + $0x280] sm:$0xff] }
   0xe   :  { %266 = vmatprep.subr.mxu0 %v65_v21  ;;  %336 = vmatpush1.msra.mxu1 %v130_v22  ;;  %v58_v35 = vld [vmem:[%s1568_s1 + $0x70] sm:$0xff]  ;;  %v123_v36 = vld [vmem:[%s1568_s1 + $0x278] sm:$0xff]  ;;  %v57_v37 = vld [vmem:[%s1568_s1 + $0x68] sm:$0xff] }
   0xf   :  { %267 = vmatpush1.msra.mxu0 %v64_v23  ;;  %337 = vmatprep.subr.mxu1 %v129_v24  ;;  %v122_v38 = vld [vmem:[%s1568_s1 + $0x270] sm:$0xff]  ;;  %v56_v39 = vld [vmem:[%s1568_s1 + $0x60] sm:$0xff]  ;;  %v121_v40 = vld [vmem:[%s1568_s1 + $0x268] sm:$0xff] }
  0x10   :  { %268 = vmatprep.subr.mxu0 %v63_v25  ;;  %338 = vmatpush1.msra.mxu1 %v128_v26  ;;  %v55_v41 = vld [vmem:[%s1568_s1 + $0x58] sm:$0xff]  ;;  %v120_v42 = vld [vmem:[%s1568_s1 + $0x260] sm:$0xff]  ;;  %v54_v43 = vld [vmem:[%s1568_s1 + $0x50] sm:$0xff] }
  0x11   :  { %269 = vmatpush1.msra.mxu0 %v62_v27  ;;  %339 = vmatprep.subr.mxu1 %v127_v28  ;;  %v119_v44 = vld [vmem:[%s1568_s1 + $0x258] sm:$0xff]  ;;  %v53_v45 = vld [vmem:[%s1568_s1 + $0x48] sm:$0xff]  ;;  %v118_v46 = vld [vmem:[%s1568_s1 + $0x250] sm:$0xff] }
  0x12   :  { %270 = vmatprep.subr.mxu0 %v61_v29  ;;  %340 = vmatpush1.msra.mxu1 %v126_v30  ;;  %v52_v47 = vld [vmem:[%s1568_s1 + $0x40] sm:$0xff]  ;;  %v117_v48 = vld [vmem:[%s1568_s1 + $0x248] sm:$0xff]  ;;  %v51_v49 = vld [vmem:[%s1568_s1 + $0x38] sm:$0xff] }
  0x13   :  { %271 = vmatpush1.msra.mxu0 %v60_v31  ;;  %341 = vmatprep.subr.mxu1 %v125_v32  ;;  %v116_v50 = vld [vmem:[%s1568_s1 + $0x240] sm:$0xff]  ;;  %v50_v51 = vld [vmem:[%s1568_s1 + $0x30] sm:$0xff]  ;;  %v115_v52 = vld [vmem:[%s1568_s1 + $0x238] sm:$0xff] }
  0x14   :  { %272 = vmatprep.subr.mxu0 %v59_v33  ;;  %342 = vmatpush1.msra.mxu1 %v124_v34  ;;  %v49_v53 = vld [vmem:[%s1568_s1 + $0x28] sm:$0xff]  ;;  %v114_v54 = vld [vmem:[%s1568_s1 + $0x230] sm:$0xff]  ;;  %v48_v55 = vld [vmem:[%s1568_s1 + $0x20] sm:$0xff] }
  0x15   :  { %273 = vmatpush1.msra.mxu0 %v58_v35  ;;  %343 = vmatprep.subr.mxu1 %v123_v36  ;;  %v113_v56 = vld [vmem:[%s1568_s1 + $0x228] sm:$0xff]  ;;  %v47_v57 = vld [vmem:[%s1568_s1 + $0x18] sm:$0xff]  ;;  %v112_v58 = vld [vmem:[%s1568_s1 + $0x220] sm:$0xff] }
  0x16   :  { %274 = vmatprep.subr.mxu0 %v57_v37  ;;  %344 = vmatpush1.msra.mxu1 %v122_v38  ;;  %v46_v59 = vld [vmem:[%s1568_s1 + $0x10] sm:$0xff]  ;;  %v111_v60 = vld [vmem:[%s1568_s1 + $0x218] sm:$0xff]  ;;  %v45_v61 = vld [vmem:[%s1568_s1 + $0x8] sm:$0xff] }
  0x17   :  { %275 = vmatpush1.msra.mxu0 %v56_v39  ;;  %345 = vmatprep.subr.mxu1 %v121_v40  ;;  %v110_v62 = vld [vmem:[%s1568_s1 + $0x210] sm:$0xff]  ;;  %v44_v63 = vld [vmem:[%s1568_s1] sm:$0xff]  ;;  %v109_v0 = vld [vmem:[%s1568_s1 + $0x208] sm:$0xff] }
  0x18   :  { %276 = vmatprep.subr.mxu0 %v55_v41  ;;  %346 = vmatpush1.msra.mxu1 %v120_v42  ;;  %v107_v1 = vld [vmem:[%s1568_s1 + $0x1f8] sm:$0xff]  ;;  %v108_v2 = vld [vmem:[%s1568_s1 + $0x200] sm:$0xff]  ;;  %v106_v3 = vld [vmem:[%s1568_s1 + $0x1f0] sm:$0xff] }
  0x19   :  { %277 = vmatpush1.msra.mxu0 %v54_v43  ;;  %347 = vmatprep.subr.mxu1 %v119_v44  ;;  %v171_v4 = vld [vmem:[%s1568_s1 + $0x3f8] sm:$0xff]  ;;  %v105_v5 = vld [vmem:[%s1568_s1 + $0x1e8] sm:$0xff]  ;;  %v170_v6 = vld [vmem:[%s1568_s1 + $0x3f0] sm:$0xff] }
  0x1a   :  { %278 = vmatprep.subr.mxu0 %v53_v45  ;;  %348 = vmatpush1.msra.mxu1 %v118_v46  ;;  %v104_v7 = vld [vmem:[%s1568_s1 + $0x1e0] sm:$0xff]  ;;  %v169_v8 = vld [vmem:[%s1568_s1 + $0x3e8] sm:$0xff]  ;;  %v103_v9 = vld [vmem:[%s1568_s1 + $0x1d8] sm:$0xff] }
  0x1b   :  { %279 = vmatpush1.msra.mxu0 %v52_v47  ;;  %349 = vmatprep.subr.mxu1 %v117_v48  ;;  %v168_v10 = vld [vmem:[%s1568_s1 + $0x3e0] sm:$0xff]  ;;  %v102_v11 = vld [vmem:[%s1568_s1 + $0x1d0] sm:$0xff]  ;;  %v167_v12 = vld [vmem:[%s1568_s1 + $0x3d8] sm:$0xff] }
  0x1c   :  { %280 = vmatprep.subr.mxu0 %v51_v49  ;;  %350 = vmatpush1.msra.mxu1 %v116_v50  ;;  %v101_v13 = vld [vmem:[%s1568_s1 + $0x1c8] sm:$0xff]  ;;  %v166_v14 = vld [vmem:[%s1568_s1 + $0x3d0] sm:$0xff]  ;;  %v100_v15 = vld [vmem:[%s1568_s1 + $0x1c0] sm:$0xff] }
  0x1d   :  { %281 = vmatpush1.msra.mxu0 %v50_v51  ;;  %351 = vmatprep.subr.mxu1 %v115_v52  ;;  %v165_v16 = vld [vmem:[%s1568_s1 + $0x3c8] sm:$0xff]  ;;  %v99_v17 = vld [vmem:[%s1568_s1 + $0x1b8] sm:$0xff]  ;;  %v164_v18 = vld [vmem:[%s1568_s1 + $0x3c0] sm:$0xff] }
  0x1e   :  { %282 = vmatprep.subr.mxu0 %v49_v53  ;;  %352 = vmatpush1.msra.mxu1 %v114_v54  ;;  %v98_v19 = vld [vmem:[%s1568_s1 + $0x1b0] sm:$0xff]  ;;  %v163_v20 = vld [vmem:[%s1568_s1 + $0x3b8] sm:$0xff]  ;;  %v97_v21 = vld [vmem:[%s1568_s1 + $0x1a8] sm:$0xff] }
  0x1f   :  { %283 = vmatpush1.msra.mxu0 %v48_v55  ;;  %353 = vmatprep.subr.mxu1 %v113_v56  ;;  %v162_v22 = vld [vmem:[%s1568_s1 + $0x3b0] sm:$0xff]  ;;  %v96_v23 = vld [vmem:[%s1568_s1 + $0x1a0] sm:$0xff]  ;;  %v161_v24 = vld [vmem:[%s1568_s1 + $0x3a8] sm:$0xff] }
  0x20   :  { %284 = vmatprep.subr.mxu0 %v47_v57  ;;  %354 = vmatpush1.msra.mxu1 %v112_v58  ;;  %v95_v25 = vld [vmem:[%s1568_s1 + $0x198] sm:$0xff]  ;;  %v160_v26 = vld [vmem:[%s1568_s1 + $0x3a0] sm:$0xff]  ;;  %v94_v27 = vld [vmem:[%s1568_s1 + $0x190] sm:$0xff] }
  0x21   :  { %285 = vmatpush1.msra.mxu0 %v46_v59  ;;  %355 = vmatprep.subr.mxu1 %v111_v60  ;;  %v159_v28 = vld [vmem:[%s1568_s1 + $0x398] sm:$0xff]  ;;  %v93_v29 = vld [vmem:[%s1568_s1 + $0x188] sm:$0xff]  ;;  %v158_v30 = vld [vmem:[%s1568_s1 + $0x390] sm:$0xff] }
  0x22   :  { %286 = vmatprep.subr.mxu0 %v45_v61  ;;  %356 = vmatpush1.msra.mxu1 %v110_v62  ;;  %v92_v31 = vld [vmem:[%s1568_s1 + $0x180] sm:$0xff]  ;;  %v157_v32 = vld [vmem:[%s1568_s1 + $0x388] sm:$0xff]  ;;  %v91_v33 = vld [vmem:[%s1568_s1 + $0x178] sm:$0xff] }
  0x23   :  { %287 = vmatpush1.msra.mxu0 %v44_v63  ;;  %357 = vmatprep.subr.mxu1 %v109_v0  ;;  %v156_v34 = vld [vmem:[%s1568_s1 + $0x380] sm:$0xff]  ;;  %v90_v35 = vld [vmem:[%s1568_s1 + $0x170] sm:$0xff]  ;;  %v155_v36 = vld [vmem:[%s1568_s1 + $0x378] sm:$0xff] }
  0x24   :  { %288 = vmatprep.subr.mxu0 %v107_v1  ;;  %358 = vmatpush1.msra.mxu1 %v108_v2  ;;  %v89_v37 = vld [vmem:[%s1568_s1 + $0x168] sm:$0xff]  ;;  %v154_v38 = vld [vmem:[%s1568_s1 + $0x370] sm:$0xff]  ;;  %v88_v39 = vld [vmem:[%s1568_s1 + $0x160] sm:$0xff] }
  0x25   :  { %289 = vmatpush2.msra.mxu0 %v106_v3  ;;  %359 = vmatprep.subr.mxu1 %v171_v4  ;;  %v153_v40 = vld [vmem:[%s1568_s1 + $0x368] sm:$0xff]  ;;  %v87_v41 = vld [vmem:[%s1568_s1 + $0x158] sm:$0xff]  ;;  %v152_v42 = vld [vmem:[%s1568_s1 + $0x360] sm:$0xff] }
  0x26   :  { %290 = vmatprep.subr.mxu0 %v105_v5  ;;  %360 = vmatpush2.msra.mxu1 %v170_v6  ;;  %v86_v43 = vld [vmem:[%s1568_s1 + $0x150] sm:$0xff]  ;;  %v151_v44 = vld [vmem:[%s1568_s1 + $0x358] sm:$0xff]  ;;  %v85_v45 = vld [vmem:[%s1568_s1 + $0x148] sm:$0xff] }
  0x27   :  { %291 = vmatpush2.msra.mxu0 %v104_v7  ;;  %361 = vmatprep.subr.mxu1 %v169_v8  ;;  %v150_v46 = vld [vmem:[%s1568_s1 + $0x350] sm:$0xff]  ;;  %v84_v47 = vld [vmem:[%s1568_s1 + $0x140] sm:$0xff]  ;;  %v149_v48 = vld [vmem:[%s1568_s1 + $0x348] sm:$0xff] }
  0x28   :  { %292 = vmatprep.subr.mxu0 %v103_v9  ;;  %362 = vmatpush2.msra.mxu1 %v168_v10  ;;  %v83_v49 = vld [vmem:[%s1568_s1 + $0x138] sm:$0xff]  ;;  %v148_v50 = vld [vmem:[%s1568_s1 + $0x340] sm:$0xff]  ;;  %v82_v51 = vld [vmem:[%s1568_s1 + $0x130] sm:$0xff] }
  0x29   :  { %293 = vmatpush2.msra.mxu0 %v102_v11  ;;  %363 = vmatprep.subr.mxu1 %v167_v12  ;;  %v147_v52 = vld [vmem:[%s1568_s1 + $0x338] sm:$0xff]  ;;  %v81_v53 = vld [vmem:[%s1568_s1 + $0x128] sm:$0xff]  ;;  %v146_v54 = vld [vmem:[%s1568_s1 + $0x330] sm:$0xff] }
  0x2a   :  { %294 = vmatprep.subr.mxu0 %v101_v13  ;;  %364 = vmatpush2.msra.mxu1 %v166_v14  ;;  %v80_v55 = vld [vmem:[%s1568_s1 + $0x120] sm:$0xff]  ;;  %v145_v56 = vld [vmem:[%s1568_s1 + $0x328] sm:$0xff]  ;;  %v79_v57 = vld [vmem:[%s1568_s1 + $0x118] sm:$0xff] }
  0x2b   :  { %295 = vmatpush2.msra.mxu0 %v100_v15  ;;  %365 = vmatprep.subr.mxu1 %v165_v16  ;;  %v144_v58 = vld [vmem:[%s1568_s1 + $0x320] sm:$0xff]  ;;  %v78_v59 = vld [vmem:[%s1568_s1 + $0x110] sm:$0xff]  ;;  %v143_v60 = vld [vmem:[%s1568_s1 + $0x318] sm:$0xff] }
  0x2c   :  { %296 = vmatprep.subr.mxu0 %v99_v17  ;;  %366 = vmatpush2.msra.mxu1 %v164_v18  ;;  %v77_v61 = vld [vmem:[%s1568_s1 + $0x108] sm:$0xff]  ;;  %v76_v63 = vld [vmem:[%s1568_s1 + $0x100] sm:$0xff]  ;;  %v142_v0 = vld [vmem:[%s1568_s1 + $0x310] sm:$0xff] }
  0x2d   :  { %297 = vmatpush2.msra.mxu0 %v98_v19  ;;  %367 = vmatprep.subr.mxu1 %v163_v20  ;;  %v38_v62 = vld [vmem:[%s1567_s0 + $0x8] sm:$0xff]  ;;  %v37_v1 = vld [vmem:[%s1567_s0] sm:$0xff]  ;;  %v203_v3 = vld [vmem:[%s1568_s1 + $0x4f8] sm:$0xff] }
  0x2e   :  { %298 = vmatprep.subr.mxu0 %v97_v21  ;;  %368 = vmatpush2.msra.mxu1 %v162_v22  ;;  %v141_v2 = vld [vmem:[%s1568_s1 + $0x308] sm:$0xff]  ;;  %v140_v4 = vld [vmem:[%s1568_s1 + $0x300] sm:$0xff]  ;;  %v40_v5 = vld [vmem:[%s1567_s0 + $0x18] sm:$0xff] }
  0x2f   :  { %299 = vmatpush2.msra.mxu0 %v96_v23  ;;  %369 = vmatprep.subr.mxu1 %v161_v24  ;;  %v202_v6 = vld [vmem:[%s1568_s1 + $0x4f0] sm:$0xff]  ;;  %v201_v8 = vld [vmem:[%s1568_s1 + $0x4e8] sm:$0xff]  ;;  %v200_v9 = vld [vmem:[%s1568_s1 + $0x4e0] sm:$0xff] }
  0x30   :  { %300 = vmatprep.subr.mxu0 %v95_v25  ;;  %370 = vmatpush2.msra.mxu1 %v160_v26  ;;  %v39_v7 = vld [vmem:[%s1567_s0 + $0x10] sm:$0xff]  ;;  %v239_v10 = vld [vmem:[%s1568_s1 + $0x618] sm:$0xff]  ;;  %v237_v14 = vld [vmem:[%s1568_s1 + $0x608] sm:$0xff] }
  0x31   :  { %301 = vmatpush2.msra.mxu0 %v94_v27  ;;  %371 = vmatprep.subr.mxu1 %v159_v28  ;;  %v199_v11 = vld [vmem:[%s1568_s1 + $0x4d8] sm:$0xff]  ;;  %v238_v12 = vld [vmem:[%s1568_s1 + $0x610] sm:$0xff] }
  0x32   :  { %302 = vmatprep.subr.mxu0 %v93_v29  ;;  %372 = vmatpush2.msra.mxu1 %v158_v30  ;;  %v198_v13 = vld [vmem:[%s1568_s1 + $0x4d0] sm:$0xff] }
  0x33   :  { %303 = vmatpush2.msra.mxu0 %v92_v31  ;;  %373 = vmatprep.subr.mxu1 %v157_v32 }
  0x34   :  { %304 = vmatprep.subr.mxu0 %v91_v33  ;;  %374 = vmatpush2.msra.mxu1 %v156_v34 }
  0x35   :  { %305 = vmatpush2.msra.mxu0 %v90_v35  ;;  %375 = vmatprep.subr.mxu1 %v155_v36 }
  0x36   :  { %306 = vmatprep.subr.mxu0 %v89_v37  ;;  %376 = vmatpush2.msra.mxu1 %v154_v38 }
  0x37   :  { %307 = vmatpush2.msra.mxu0 %v88_v39  ;;  %377 = vmatprep.subr.mxu1 %v153_v40 }
  0x38   :  { %308 = vmatprep.subr.mxu0 %v87_v41  ;;  %378 = vmatpush2.msra.mxu1 %v152_v42 }
  0x39   :  { %309 = vmatpush2.msra.mxu0 %v86_v43  ;;  %379 = vmatprep.subr.mxu1 %v151_v44 }
  0x3a   :  { %310 = vmatprep.subr.mxu0 %v85_v45  ;;  %380 = vmatpush2.msra.mxu1 %v150_v46 }
  0x3b   :  { %311 = vmatpush2.msra.mxu0 %v84_v47  ;;  %381 = vmatprep.subr.mxu1 %v149_v48 }
  0x3c   :  { %312 = vmatprep.subr.mxu0 %v83_v49  ;;  %382 = vmatpush2.msra.mxu1 %v148_v50 }
  0x3d   :  { %313 = vmatpush2.msra.mxu0 %v82_v51  ;;  %383 = vmatprep.subr.mxu1 %v147_v52 }
  0x3e   :  { %314 = vmatprep.subr.mxu0 %v81_v53  ;;  %384 = vmatpush2.msra.mxu1 %v146_v54 }
  0x3f   :  { %315 = vmatpush2.msra.mxu0 %v80_v55  ;;  %385 = vmatprep.subr.mxu1 %v145_v56 }
  0x40   :  { %316 = vmatprep.subr.mxu0 %v79_v57  ;;  %386 = vmatpush2.msra.mxu1 %v144_v58 }
  0x41   :  { %317 = vmatpush2.msra.mxu0 %v78_v59  ;;  %387 = vmatprep.subr.mxu1 %v143_v60 }
  0x42   :  { %318 = vmatprep.subr.mxu0 %v77_v61  ;;  %320 = vmatprep.mubr.f32.mxu0 %v38_v62 }
  0x43   :  { %319 = vmatpush2.msra.mxu0 %v76_v63  ;;  %388 = vmatpush2.msra.mxu1 %v142_v0 }
  0x44   :  { %321 = vmatmul.mubr.f32.vlgmr.msra.gmra.mxu0 %v37_v1  ;;  %389 = vmatprep.subr.mxu1 %v141_v2 }
  0x45   :  { %398 = vmatprep.subr.mxu0 %v203_v3  ;;  %390 = vmatpush2.msra.mxu1 %v140_v4 }
  0x46   :  { %391 = vmatprep.mubr.f32.mxu1 %v40_v5  ;;  %399 = vmatpush1.msra.mxu0 %v202_v6 }
  0x47   :  { %392 = vmatmul.mubr.f32.vlgmr.msra.gmra.mxu1 %v39_v7  ;;  %400 = vmatprep.subr.mxu0 %v201_v8 }
  0x48   :  { %18 = vsyncpa [#allocation5], 0  ;;  %401 = vmatpush1.msra.mxu0 %v200_v9  ;;  %v197_v15 = vld [vmem:[%s1568_s1 + $0x4c8] sm:$0xff]  ;;  %497 = vmatprep.subr.mxu1 %v239_v10  ;;  %v196_v17 = vld [vmem:[%s1568_s1 + $0x4c0] sm:$0xff]  ;;  %vm252_vm0 = vcmask 130048   ;;  %v840_v24 = vmov 0.0  }
  0x49   :  { %v42_v16 = vld [vmem:[%s1567_s0 + $0x28] sm:$0xff]  ;;  %402 = vmatprep.subr.mxu0 %v199_v11  ;;  %498 = vmatpush1.msra.mxu1 %v238_v12  ;;  %v236_v18 = vld [vmem:[%s1568_s1 + $0x600] sm:$0xff]  ;;  %v195_v19 = vld [vmem:[%s1568_s1 + $0x4b8] sm:$0xff]  ;;  %vm549_vm1 = vcmask 523264   ;;  %vm842_vm3 = vmmov 0   ;;  %s843_s17 = smov 64  }
  0x4a   :  { %403 = vmatpush1.msra.mxu0 %v198_v13  ;;  %499 = vmatprep.subr.mxu1 %v237_v14  ;;  %v194_v20 = vld [vmem:[%s1568_s1 + $0x4b0] sm:$0xff]  ;;  %v193_v22 = vld [vmem:[%s1568_s1 + $0x4a8] sm:$0xff]  ;;  %v192_v23 = vld [vmem:[%s1568_s1 + $0x4a0] sm:$0xff]  ;;  %v242_v14 = vlaneseq  ;;  %vm726_vm5 = vcmask 605696   ;;  %vm737_vm6 = vcmask 80896  }
  0x4b   :  { %404 = vmatprep.subr.mxu0 %v197_v15  ;;  %462 = vmatprep.mubr.f32.mxu0 %v42_v16  ;;  %v43_v21 = vld [vmem:[%s1567_s0 + $0x30] sm:$0xff]  ;;  %v191_v25 = vld [vmem:[%s1568_s1 + $0x498] sm:$0xff]  ;;  %v189_v27 = vld [vmem:[%s1568_s1 + $0x488] sm:$0xff] }
  0x4c   :  { %405 = vmatpush1.msra.mxu0 %v196_v17  ;;  %500 = vmatpush1.msra.mxu1 %v236_v18  ;;  %v190_v26 = vld [vmem:[%s1568_s1 + $0x490] sm:$0xff]  ;;  %v188_v28 = vld [vmem:[%s1568_s1 + $0x480] sm:$0xff]  ;;  %v187_v29 = vld [vmem:[%s1568_s1 + $0x478] sm:$0xff]  ;;  %v243_v15 = vshrl.u32 %v242_v14, 7 }
  0x4d   :  { %406 = vmatprep.subr.mxu0 %v195_v19  ;;  %533 = vmatprep.mubr.f32.mxu1 %v840_v24  ;;  %v186_v30 = vld [vmem:[%s1568_s1 + $0x470] sm:$0xff]  ;;  %v185_v31 = vld [vmem:[%s1568_s1 + $0x468] sm:$0xff]  ;;  %v184_v32 = vld [vmem:[%s1568_s1 + $0x460] sm:$0xff] }
  0x4e   :  { %407 = vmatpush1.msra.mxu0 %v194_v20  ;;  %763 = vmatmul.mubr.msk.f32.vlgmr.msra.gmra.mxu1 %vm252_vm0, %v43_v21  ;;  %v183_v33 = vld [vmem:[%s1568_s1 + $0x458] sm:$0xff]  ;;  %v182_v34 = vld [vmem:[%s1568_s1 + $0x450] sm:$0xff]  ;;  %v181_v35 = vld [vmem:[%s1568_s1 + $0x448] sm:$0xff]  ;;  %v248_v16 = vsub.s32 1, %v243_v15 }
  0x4f   :  { %408 = vmatprep.subr.mxu0 %v193_v22  ;;  %779 = vmatprep.subr.mxu1 %v840_v24  ;;  %v180_v36 = vld [vmem:[%s1568_s1 + $0x440] sm:$0xff]  ;;  %v179_v37 = vld [vmem:[%s1568_s1 + $0x438] sm:$0xff]  ;;  %v178_v38 = vld [vmem:[%s1568_s1 + $0x430] sm:$0xff] }
  0x50   :  { %409 = vmatpush1.msra.mxu0 %v192_v23  ;;  %v177_v39 = vld [vmem:[%s1568_s1 + $0x428] sm:$0xff]  ;;  %v176_v40 = vld [vmem:[%s1568_s1 + $0x420] sm:$0xff]  ;;  %v175_v41 = vld [vmem:[%s1568_s1 + $0x418] sm:$0xff]  ;;  %795 = vmatprep.mubr.msk.f32.mxu1 %vm842_vm3, %v840_v24 }
  0x51   :  { %410 = vmatprep.subr.mxu0 %v191_v25  ;;  %v174_v42 = vld [vmem:[%s1568_s1 + $0x410] sm:$0xff]  ;;  %v173_v43 = vld [vmem:[%s1568_s1 + $0x408] sm:$0xff]  ;;  %v172_v44 = vld [vmem:[%s1568_s1 + $0x400] sm:$0xff] }
  0x52   :  { %411 = vmatpush1.msra.mxu0 %v190_v26  ;;  %v235_v45 = vld [vmem:[%s1568_s1 + $0x5f8] sm:$0xff]  ;;  %v234_v46 = vld [vmem:[%s1568_s1 + $0x5f0] sm:$0xff]  ;;  %v233_v47 = vld [vmem:[%s1568_s1 + $0x5e8] sm:$0xff]  ;;  %v244_v26 = vsub.s32 0, %v243_v15 }
  0x53   :  { %412 = vmatprep.subr.mxu0 %v189_v27  ;;  %v232_v48 = vld [vmem:[%s1568_s1 + $0x5e0] sm:$0xff]  ;;  %v231_v49 = vld [vmem:[%s1568_s1 + $0x5d8] sm:$0xff]  ;;  %v230_v50 = vld [vmem:[%s1568_s1 + $0x5d0] sm:$0xff] }
  0x54   :  { %413 = vmatpush1.msra.mxu0 %v188_v28  ;;  %v229_v51 = vld [vmem:[%s1568_s1 + $0x5c8] sm:$0xff]  ;;  %v228_v52 = vld [vmem:[%s1568_s1 + $0x5c0] sm:$0xff]  ;;  %v227_v53 = vld [vmem:[%s1568_s1 + $0x5b8] sm:$0xff] }
  0x55   :  { %414 = vmatprep.subr.mxu0 %v187_v29  ;;  %v226_v54 = vld [vmem:[%s1568_s1 + $0x5b0] sm:$0xff]  ;;  %v225_v55 = vld [vmem:[%s1568_s1 + $0x5a8] sm:$0xff]  ;;  %v224_v56 = vld [vmem:[%s1568_s1 + $0x5a0] sm:$0xff] }
  0x56   :  { %415 = vmatpush1.msra.mxu0 %v186_v30  ;;  %v223_v57 = vld [vmem:[%s1568_s1 + $0x598] sm:$0xff]  ;;  %v222_v58 = vld [vmem:[%s1568_s1 + $0x590] sm:$0xff]  ;;  %v221_v59 = vld [vmem:[%s1568_s1 + $0x588] sm:$0xff] }
  0x57   :  { %416 = vmatprep.subr.mxu0 %v185_v31  ;;  %v220_v60 = vld [vmem:[%s1568_s1 + $0x580] sm:$0xff]  ;;  %v219_v61 = vld [vmem:[%s1568_s1 + $0x578] sm:$0xff]  ;;  %v218_v62 = vld [vmem:[%s1568_s1 + $0x570] sm:$0xff] }
  0x58   :  { %417 = vmatpush1.msra.mxu0 %v184_v32  ;;  %v217_v63 = vld [vmem:[%s1568_s1 + $0x568] sm:$0xff]  ;;  %v216_v0 = vld [vmem:[%s1568_s1 + $0x560] sm:$0xff]  ;;  %v215_v1 = vld [vmem:[%s1568_s1 + $0x558] sm:$0xff] }
  0x59   :  { %418 = vmatprep.subr.mxu0 %v183_v33  ;;  %v214_v2 = vld [vmem:[%s1568_s1 + $0x550] sm:$0xff]  ;;  %v213_v3 = vld [vmem:[%s1568_s1 + $0x548] sm:$0xff]  ;;  %v212_v4 = vld [vmem:[%s1568_s1 + $0x540] sm:$0xff] }
  0x5a   :  { %419 = vmatpush1.msra.mxu0 %v182_v34  ;;  %v211_v5 = vld [vmem:[%s1568_s1 + $0x538] sm:$0xff]  ;;  %v210_v6 = vld [vmem:[%s1568_s1 + $0x530] sm:$0xff]  ;;  %v209_v7 = vld [vmem:[%s1568_s1 + $0x528] sm:$0xff] }
  0x5b   :  { %420 = vmatprep.subr.mxu0 %v181_v35  ;;  %v208_v8 = vld [vmem:[%s1568_s1 + $0x520] sm:$0xff]  ;;  %v207_v9 = vld [vmem:[%s1568_s1 + $0x518] sm:$0xff]  ;;  %v206_v10 = vld [vmem:[%s1568_s1 + $0x510] sm:$0xff] }
  0x5c   :  { %421 = vmatpush1.msra.mxu0 %v180_v36  ;;  %v205_v11 = vld [vmem:[%s1568_s1 + $0x508] sm:$0xff]  ;;  %v204_v12 = vld [vmem:[%s1568_s1 + $0x500] sm:$0xff] }
  0x5d   :  { %422 = vmatprep.subr.mxu0 %v179_v37  ;;  %v41_v13 = vld [vmem:[%s1567_s0 + $0x20] sm:$0xff] }
  0x5e   :  { %423 = vmatpush1.msra.mxu0 %v178_v38  ;;  %v240_v17 = vld [vmem:[%s1569_s2] sm:$0x3]  ;;  %v841_v38 = vmov 0  }
  0x5f   :  { %424 = vmatprep.subr.mxu0 %v177_v39  ;;  %v249_v18 = vrot.slane %v240_v17, %v248_v16  ;;  %v245_v27 = vrot.slane %v240_v17, %v244_v26  ;;  %v764_v34 = vld [vmem:[%s1570_s3] ss:$0 sm:$0xff]  ;;  %805 = vset.pattern.permute.xlu1 %v841_v38  ;;  %v769_v14 = vld [vmem:[#allocation3] ss:$0 sm:$0xff] }
  0x60   :  { %425 = vmatpush1.msra.mxu0 %v176_v40  ;;  %804 = vset.pattern.permute.xlu0 %v841_v38  ;;  %v765_v39 = vld [vmem:[#allocation2] ss:$0 sm:$0xff] }
  0x61   :  { %426 = vmatprep.subr.mxu0 %v175_v41 }
  0x62   :  { %427 = vmatpush1.msra.mxu0 %v174_v42 }
  0x63   :  { %428 = vmatprep.subr.mxu0 %v173_v43 }
  0x64   :  { %429 = vmatpush1.msra.mxu0 %v172_v44 }
  0x65   :  { %430 = vmatprep.subr.mxu0 %v235_v45 }
  0x66   :  { %431 = vmatpush2.msra.mxu0 %v234_v46 }
  0x67   :  { %432 = vmatprep.subr.mxu0 %v233_v47 }
  0x68   :  { %433 = vmatpush2.msra.mxu0 %v232_v48 }
  0x69   :  { %434 = vmatprep.subr.mxu0 %v231_v49 }
  0x6a   :  { %435 = vmatpush2.msra.mxu0 %v230_v50 }
  0x6b   :  { %436 = vmatprep.subr.mxu0 %v229_v51 }
  0x6c   :  { %437 = vmatpush2.msra.mxu0 %v228_v52  ;;  %v596_v52 = vld [vmem:[%s1572_s5 + $0x38] sm:$0xff] }
  0x6d   :  { %438 = vmatprep.subr.mxu0 %v227_v53  ;;  %v595_v53 = vld [vmem:[%s1572_s5 + $0x30] sm:$0xff]  ;;  %780 = vmatpush3.msra.mxu1 %v596_v52 }
  0x6e   :  { %439 = vmatpush2.msra.mxu0 %v226_v54  ;;  %781 = vmatprep.subr.mxu1 %v840_v24 }
  0x6f   :  { %440 = vmatprep.subr.mxu0 %v225_v55  ;;  %v594_v55 = vld [vmem:[%s1572_s5 + $0x28] sm:$0xff]  ;;  %782 = vmatpush3.msra.mxu1 %v595_v53 }
  0x70   :  { %441 = vmatpush2.msra.mxu0 %v224_v56  ;;  %783 = vmatprep.subr.mxu1 %v840_v24 }
  0x71   :  { %442 = vmatprep.subr.mxu0 %v223_v57  ;;  %v593_v57 = vld [vmem:[%s1572_s5 + $0x20] sm:$0xff]  ;;  %784 = vmatpush3.msra.mxu1 %v594_v55 }
  0x72   :  { %443 = vmatpush2.msra.mxu0 %v222_v58  ;;  %785 = vmatprep.subr.mxu1 %v840_v24 }
  0x73   :  { %444 = vmatprep.subr.mxu0 %v221_v59  ;;  %786 = vmatpush3.msra.mxu1 %v593_v57 }
  0x74   :  { %445 = vmatpush2.msra.mxu0 %v220_v60  ;;  %v592_v60 = vld [vmem:[%s1572_s5 + $0x18] sm:$0xff]  ;;  %787 = vmatprep.subr.mxu1 %v840_v24 }
  0x75   :  { %446 = vmatprep.subr.mxu0 %v219_v61  ;;  %788 = vmatpush3.msra.mxu1 %v592_v60 }
  0x76   :  { %447 = vmatpush2.msra.mxu0 %v218_v62  ;;  %v591_v62 = vld [vmem:[%s1572_s5 + $0x10] sm:$0xff]  ;;  %789 = vmatprep.subr.mxu1 %v840_v24 }
  0x77   :  { %448 = vmatprep.subr.mxu0 %v217_v63  ;;  %v590_v63 = vld [vmem:[%s1572_s5 + $0x8] sm:$0xff]  ;;  %790 = vmatpush3.msra.mxu1 %v591_v62 }
  0x78   :  { %449 = vmatpush2.msra.mxu0 %v216_v0  ;;  %791 = vmatprep.subr.mxu1 %v840_v24  ;;  %v589_v0 = vld [vmem:[%s1572_s5] sm:$0xff] }
  0x79   :  { %450 = vmatprep.subr.mxu0 %v215_v1  ;;  %792 = vmatpush3.msra.mxu1 %v590_v63 }
  0x7a   :  { %451 = vmatpush2.msra.mxu0 %v214_v2  ;;  %793 = vmatprep.subr.mxu1 %v840_v24  ;;  %v768_v24 = vld [vmem:[%s1574_s7] ss:$0 sm:$0xff]  ;;  %s845_s7 = smov [#allocation4]  }
  0x7b   :  { %452 = vmatprep.subr.mxu0 %v213_v3  ;;  %794 = vmatpush3.msra.mxu1 %v589_v0  ;;  %s755_s23 = sshll.u32 %s845_s7, 4  ;;  %s756_s23 = int_to_ptr.vmem [resolvable:$true] %s755_s23 }
  0x7c   :  { %453 = vmatpush2.msra.mxu0 %v212_v4  ;;  %s818_s24 = scalar_lea.vmem %s756_s23, 128  ;;  %p823_p1 = scmp.lt.s32.totalorder %s756_s23, %s756_s23 }
  0x7d   :  { %454 = vmatprep.subr.mxu0 %v211_v5  ;;  %p819_p0 = scmp.ne.s32.totalorder %s756_s23, %s818_s24  ;;  %p824_p2 = scmp.lt.s32.totalorder %s818_s24, %s818_s24 }
  0x7e   :  { %455 = vmatpush2.msra.mxu0 %v210_v6 }
  0x7f   :  { %456 = vmatprep.subr.mxu0 %v209_v7  ;;  %v766_v7 = vld [vmem:[%s1573_s6] ss:$0 sm:$0xff]  ;;  %s844_s6 = smov 118   ;;  %p825_p3 = por %p824_p2, %p823_p1 }
  0x80   :  { %457 = vmatpush2.msra.mxu0 %v208_v8 }
  0x81   :  { %458 = vmatprep.subr.mxu0 %v207_v9  ;;  %p826_p4 = pnand %p825_p3, %p819_p0 }
  0x82   :  { %459 = vmatpush2.msra.mxu0 %v206_v10 }
  0x83   :  { %460 = vmatprep.subr.mxu0 %v205_v11 }
  0x84   :  { %461 = vmatpush2.msra.mxu0 %v204_v12 }
  0x85   :  { %463 = vmatmul.mubr.f32.vlgmr.msra.gmra.mxu0 %v41_v13 }
 0x104   :  { %v322_v19 = vpop.f32.mrf.mxu0 }
 0x105   :  { %v323_v28 = vadd.f32 %v322_v19, %v245_v27 }
 0x106   :  { %v324_v20 = vpop.f32.mrf.mxu0 }
 0x107   :  { %v325_v21 = vadd.f32 %v324_v20, %v249_v18  ;;  %v393_v22 = vpop.f32.mrf.mxu1 }
 0x108   :  { %v394_v29 = vadd.f32 %v393_v22, %v323_v28 }
 0x109   :  { %v395_v23 = vpop.f32.mrf.mxu1 }
 0x10a   :  { %v396_v25 = vadd.f32 %v395_v23, %v325_v21 }
 0x10e   :  { %v535_v32 = vpop.f32.mrf.mxu1 }
 0x110   :  { %v537_v56 = vpop.f32.mrf.mxu1 }
 0x145   :  { %v464_v30 = vpop.f32.mrf.mxu0 }
 0x146   :  { %v465_v31 = vadd.f32 %v464_v30, %v394_v29 }
 0x147   :  { %v466_v51 = vpop.f32.mrf.mxu0 }
 0x148   :  { %v536_v33 = vadd.f32 %v535_v32, %v465_v31  ;;  %v467_v54 = vadd.f32 %v466_v51, %v396_v25 }
 0x14a   :  { %v540_v35 = vmax.f32 %v536_v33, 0.0  ;;  %v538_v58 = vadd.f32 %v537_v56, %v467_v54 }
 0x14c   :  { %v548_v36 = vmul.f32 %v764_v34, %v540_v35 }
 0x14e   :  { %v550_v37 = vsel %vm549_vm1, %v548_v36, 0.0 }
 0x14f   :  { %551 = vadd.xlane.f32.xlu0 %v550_v37 }
 0x1d8   :  { %v552_v40 = vpop.xlane.xlu0 %551 }
 0x1d9   :  { %v560_v41 = vadd.f32 %v765_v39, %v552_v40 }
 0x1db   :  { %v561_v42 = vand.u32 2147483647, %v560_v41  ;;  %vm565_vm2 = vcmp.ge.f32.partialorder %v560_v41, 0.0 }
 0x1dd   :  { %v562_v43 = vsub.f32 0.0, %v561_v42 }
 0x1df   :  { %v563_v44 = vmul.f32 1.442695, %v562_v43 }
 0x1e1   :  { %806 = vpow2.f32 %v563_v44 }
 0x1ee   :  { %v807_v45 = vpop.eup %806 }
 0x1ef   :  { %v567_v46 = vadd.f32 1.0, %v807_v45  ;;  %v566_v48 = vsel %vm565_vm2, %v807_v45, 1.0 }
 0x1f1   :  { %808 = vrcp.f32 %v567_v46 }
 0x1fe   :  { %v809_v47 = vpop.eup %808 }
 0x1ff   :  { %v569_v49 = vmul.f32 %v809_v47, %v566_v48 }
 0x201   :  { %572 = vperm.xlu1 %805, %v569_v49   ;;  %v576_v50 = vsub.f32 1.0, %v569_v49 }
 0x203   :  { %579 = vperm.xlu0 %804, %v576_v50  }
 0x27c   :  { %v573_v1 = vpop.permute.xlu1 %572 }
 0x27d   :  { %v575_v2 = vmul.f32 %v573_v1, %v536_v33 }
 0x27e   :  { %v580_v59 = vpop.permute.xlu0 %579 }
 0x27f   :  { %v582_v61 = vmul.f32 %v580_v59, %v538_v58 }
 0x281   :  { %584 = vrot.lane.b32.xlu1 %v582_v61, %s843_s17 }
 0x2f3   :  { %v585_v3 = vpop.permute.xlu1 %584 }
 0x2f4   :  { %v587_v4 = vadd.f32 %v585_v3, %v575_v2 }
 0x2f6   :  { %v588_v5 = vmax.f32 %v587_v4, 0.0 }
 0x2f8   :  { %605 = vrot.lane.b32.xlu1 %v588_v5, %s843_s17 }
 0x36a   :  { %v606_v6 = vpop.permute.xlu1 %605 }
 0x36b   :  { %796 = vmatmul.mubr.msk.f32.vlgmr.msra.gmra.mxu1 %vm549_vm1, %v606_v6 }
 0x42b   :  { %v675_v8 = vpop.f32.mrf.mxu1 }
 0x42c   :  { %v676_v9 = vadd.f32 %v766_v7, %v675_v8 }
 0x42d   :  { %v797_v10 = vpop.f32.mrf.mxu1 }
 0x42e   :  { %v679_v11 = vmax.f32 %v676_v9, 0.0 }
 0x430   :  { %v687_v12 = vmul.f32 %v768_v24, %v679_v11 }
 0x432   :  { %v688_v13 = vsel %vm549_vm1, %v687_v12, 0.0 }
 0x433   :  { %689 = vadd.xlane.f32.xlu1 %v688_v13 }
 0x4bc   :  { %v690_v15 = vpop.xlane.xlu1 %689 }
 0x4bd   :  { %v698_v16 = vadd.f32 %v769_v14, %v690_v15 }
 0x4bf   :  { %v699_v17 = vand.u32 2147483647, %v698_v16  ;;  %vm703_vm4 = vcmp.ge.f32.partialorder %v698_v16, 0.0 }
 0x4c1   :  { %v700_v18 = vsub.f32 0.0, %v699_v17 }
 0x4c3   :  { %v701_v19 = vmul.f32 1.442695, %v700_v18 }
 0x4c5   :  { %810 = vpow2.f32 %v701_v19 }
 0x4d2   :  { %v811_v20 = vpop.eup %810 }
 0x4d3   :  { %v705_v21 = vadd.f32 1.0, %v811_v20  ;;  %v704_v23 = vsel %vm703_vm4, %v811_v20, 1.0 }
 0x4d5   :  { %812 = vrcp.f32 %v705_v21 }
 0x4e2   :  { %v813_v22 = vpop.eup %812 }
 0x4e3   :  { %v707_v25 = vmul.f32 %v813_v22, %v704_v23 }
 0x4e5   :  { %710 = vperm.xlu1 %805, %v707_v25   ;;  %v714_v26 = vsub.f32 1.0, %v707_v25 }
 0x4e7   :  { %717 = vperm.xlu0 %804, %v714_v26  }
 0x560   :  { %v711_v29 = vpop.permute.xlu1 %710 }
 0x561   :  { %v713_v30 = vmul.f32 %v711_v29, %v676_v9 }
 0x562   :  { %v718_v27 = vpop.permute.xlu0 %717 }
 0x563   :  { %v720_v28 = vmul.f32 %v718_v27, %v676_v9 }
 0x565   :  { %722 = vrot.lane.b32.xlu0 %v720_v28, %s844_s6 }
 0x5d7   :  { %v723_v31 = vpop.permute.xlu0 %722 }
 0x5d8   :  { %v725_v32 = vadd.f32 %v723_v31, %v713_v30 }
 0x5da   :  { %v727_v33 = vsel %vm726_vm5, %v725_v32, -inf }
 0x5db   :  { %728 = vmax.xlane.f32.xlu0 %v727_v33 }
 0x664   :  { %v729_v34 = vpop.xlane.xlu0 %728 }
 0x665   :  { %v730_v35 = vsub.f32 %v725_v32, %v729_v34 }
 0x667   :  { %v731_v36 = vmul.f32 1.442695, %v730_v35 }
 0x669   :  { %814 = vpow2.f32 %v731_v36 }
 0x676   :  { %v815_v37 = vpop.eup %814 }
 0x677   :  { %734 = vrot.lane.b32.xlu1 %v815_v37, %s843_s17 }
 0x6e9   :  { %v735_v38 = vpop.permute.xlu1 %734 }
 0x6ea   :  { %v738_v39 = vsel %vm737_vm6, %v735_v38, 0.0 }
 0x6eb   :  { %739 = vadd.xlane.f32.xlu1 %v738_v39 }
 0x774   :  { %v740_v40 = vpop.xlane.xlu1 %739 }
 0x775   :  { %816 = vlog2.f32 %v740_v40 }
 0x782   :  { %v817_v41 = vpop.eup %816 }
 0x783   :  { %v742_v42 = vmul.f32 0.6931472, %v817_v41 }
 0x785   :  { %v743_v43 = vsub.f32 %v730_v35, %v742_v42 }
 0x787   :  { %745 = vrot.lane.b32.xlu0 %v743_v43, %s843_s17 }
 0x7f9   :  { %v746_v44 = vpop.permute.xlu0 %745 }
 0x7fa   :  { %748 = vst.msk [vmem:[#allocation4] sm:$0xff] %vm737_vm6, %v746_v44 }
 0x7fb   :  { %829 = shalt.err (!%p826_p4)
}
 0x7fc   :  { %758 = dma.vmem_to_hbm [thread:$0]  %s756_s23, 128, %s1575_s9, [#allocation5]  }
 0x7fd   :  { %838 = dma.done.wait [#allocation5], 128  }
 0x7fe   :  { %839 = vsyncadd [#allocation5], 4294967168 }
 0x7ff   :  { %762 = vsyncpa [#allocation5], 1 }

</bundles_post_ra>
